<compile_context>
chip_gen: v6e
topology: v6e:2x2x1
jax: 0.10.0
libtpu: 0.0.40
codegen_flags: <defaults>
</compile_context>

<pallas_src>
import functools

import jax
import jax.numpy as jnp
from jax import lax
from jax.experimental import pallas as pl
from jax.experimental.pallas import tpu as pltpu

_VMEM_LIMIT = 48 * 1024 * 1024          # <= ~48 MiB: safe on v5e/v6e/v7x
_FUSED_BYTES_CAP = 36 * 1024 * 1024     # per-grid-step footprint cap for fused path


def _round_up(x, m):
    return (x + m - 1) // m * m


# --------------------- fused per-batch-element kernel ------------------------
def _se_fused_kernel(x_ref, w1_ref, w2_ref, o_ref, *, inv_hw):
    # x_ref: (1, C, HW) block of batch b; w1_ref: (hidden, C); w2_ref: (C, hidden)
    x = x_ref[0].astype(jnp.float32)                               # (C, HW)

    # squeeze: global average pool over the spatial (lane) axis
    y = jnp.sum(x, axis=-1, keepdims=True) * inv_hw                # (C, 1)

    # excite: column-vector MLP, weights in native PyTorch (out, in) layout
    h = jnp.dot(w1_ref[...].astype(jnp.float32), y,
                preferred_element_type=jnp.float32)                # (hidden, 1)
    sp = jnp.maximum(h, 0.0) + jnp.log1p(jnp.exp(-jnp.abs(h)))     # stable softplus
    h = h * jnp.tanh(sp)                                           # Mish
    s = jnp.dot(w2_ref[...].astype(jnp.float32), h,
                preferred_element_type=jnp.float32)                # (C, 1)
    s = jax.nn.sigmoid(s)

    # scale: broadcast the per-channel gate over the spatial lanes
    o_ref[0] = (x * s).astype(o_ref.dtype)


# --------------------- streaming fallback kernels -----------------------------
def _pool_kernel(x_ref, sum_ref, *, hw):
    # x_ref: (row_tile, lane_tile); sum_ref: (row_tile, 1) VMEM-resident accumulator.
    k = pl.program_id(1)

    @pl.when(k == 0)
    def _():
        sum_ref[...] = jnp.zeros_like(sum_ref)

    lane_tile = x_ref.shape[-1]
    lane = lax.broadcasted_iota(jnp.int32, x_ref.shape, 1)
    mask = (k * lane_tile + lane) < hw          # mask OOB lanes of a ragged last tile
    vals = jnp.where(mask, x_ref[...].astype(jnp.float32), 0.0)
    sum_ref[...] += jnp.sum(vals, axis=-1, keepdims=True)


def _scale_kernel(x_ref, s_ref, o_ref):
    # s_ref is (row_tile, 1), resident across HW tiles; broadcast per tile.
    o_ref[...] = (x_ref[...] * s_ref[...]).astype(o_ref.dtype)


def _pick_row_tile(r):
    for t in (1024, 512, 256, 128, 64, 32, 16, 8):
        if r % t == 0:
            return t
    return r  # single full-extent block along rows (always legal)


def _pick_lane_tile(hw):
    hw128 = _round_up(hw, 128)
    if hw128 <= 2048:
        return hw128
    best_t, best_waste = None, None
    for t in (2048, 1792, 1536, 1280, 1024, 768, 512):
        waste = _round_up(hw, t) - hw
        if best_waste is None or waste < best_waste:
            best_t, best_waste = t, waste
    return best_t


# ------------------------------- wrapper --------------------------------------
def se_block(x_nchw, w1, w2, *, force_streaming=False):
    """x: (B,C,H,W).  w1: (C//r, C), w2: (C, C//r) -- PyTorch Linear layout."""
    B, C, H, W = x_nchw.shape
    hidden = w1.shape[0]
    HW = H * W
    itemsize = x_nchw.dtype.itemsize
    w_bytes = (w1.size + w2.size) * w1.dtype.itemsize

    x3d = x_nchw.reshape(B, C, HW)   # free reshape (trailing dims merge)

    # Fused-path footprint: double-buffered in + out blocks plus weights + slack.
    fused_bytes = 4 * C * HW * itemsize + 2 * w_bytes + (1 << 20)
    use_fused = (not force_streaming) and fused_bytes <= _FUSED_BYTES_CAP and (
        B >= 2 or C * HW * itemsize <= (4 << 20))   # B==1 on big inputs -> streaming
                                                    # so v7x still gets >=2 grid steps

    if use_fused:
        out3d = pl.pallas_call(
            functools.partial(_se_fused_kernel, inv_hw=1.0 / float(HW)),
            out_shape=jax.ShapeDtypeStruct((B, C, HW), x_nchw.dtype),
            grid=(B,),
            in_specs=[pl.BlockSpec((1, C, HW), lambda b: (b, 0, 0)),
                      pl.BlockSpec((hidden, C), lambda b: (0, 0)),
                      pl.BlockSpec((C, hidden), lambda b: (0, 0))],
            out_specs=pl.BlockSpec((1, C, HW), lambda b: (b, 0, 0)),
            compiler_params=pltpu.CompilerParams(
                dimension_semantics=("parallel",),
                vmem_limit_bytes=_VMEM_LIMIT),
            cost_estimate=pl.CostEstimate(
                flops=2 * B * C * HW + 4 * B * C * hidden,
                transcendentals=3 * B * (C + hidden),
                bytes_accessed=2 * B * C * HW * itemsize + w_bytes),
        )(x3d, w1, w2)
        return out3d.reshape(B, C, H, W)

    # -------- streaming fallback: pool (masked) -> jnp excite -> scale --------
    R = B * C
    x2d = x3d.reshape(R, HW)
    row_tile = _pick_row_tile(R)
    lane_tile = _pick_lane_tile(HW)
    n_row = pl.cdiv(R, row_tile)
    n_hw = pl.cdiv(HW, lane_tile)
    x_bytes = R * HW * itemsize

    sums = pl.pallas_call(
        functools.partial(_pool_kernel, hw=HW),
        out_shape=jax.ShapeDtypeStruct((R, 1), jnp.float32),
        grid=(n_row, n_hw),
        in_specs=[pl.BlockSpec((row_tile, lane_tile), lambda i, k: (i, k))],
        out_specs=pl.BlockSpec((row_tile, 1), lambda i, k: (i, 0)),
        compiler_params=pltpu.CompilerParams(
            dimension_semantics=("parallel", "arbitrary"),
            vmem_limit_bytes=_VMEM_LIMIT),
        cost_estimate=pl.CostEstimate(
            flops=R * HW, transcendentals=0,
            bytes_accessed=x_bytes + R * 4),
    )(x2d)

    # Tiny excitation MLP (<1% of one MXU pass): plain jnp, no transposed copies.
    y = sums.reshape(B, C) * (1.0 / float(HW))
    h = lax.dot_general(y, w1.astype(jnp.float32), (((1,), (1,)), ((), ())))
    h = h * jnp.tanh(jax.nn.softplus(h))                           # Mish
    s = jax.nn.sigmoid(
        lax.dot_general(h, w2.astype(jnp.float32), (((1,), (1,)), ((), ()))))
    s2d = s.reshape(R, 1)

    out2d = pl.pallas_call(
        _scale_kernel,
        out_shape=jax.ShapeDtypeStruct((R, HW), x_nchw.dtype),
        grid=(n_row, n_hw),
        in_specs=[pl.BlockSpec((row_tile, lane_tile), lambda i, j: (i, j)),
                  pl.BlockSpec((row_tile, 1), lambda i, j: (i, 0))],
        out_specs=pl.BlockSpec((row_tile, lane_tile), lambda i, j: (i, j)),
        compiler_params=pltpu.CompilerParams(
            dimension_semantics=("parallel", "parallel"),
            vmem_limit_bytes=_VMEM_LIMIT),
        cost_estimate=pl.CostEstimate(
            flops=R * HW, transcendentals=0,
            bytes_accessed=2 * x_bytes + R * 4),
    )(x2d, s2d)

    return out2d.reshape(B, C, H, W)


def se_block_ref(x_nchw, w1, w2):
    """Pure-JAX reference matching the PyTorch module."""
    y = jnp.mean(x_nchw, axis=(2, 3))             # (B, C)
    h = y @ w1.T
    h = h * jnp.tanh(jax.nn.softplus(h))          # Mish
    s = jax.nn.sigmoid(h @ w2.T)                  # (B, C)
    return x_nchw * s[:, :, None, None]


if __name__ == "__main__":
    # Primary (fused-path) test shape: channels >= reduction so hidden >= 1.
    B, C, H, W = 2, 32, 16, 16
    reduction = 16
    hidden = C // reduction  # 2

    key = jax.random.PRNGKey(0)
    kx, k1, k2 = jax.random.split(key, 3)
    x = jax.random.normal(kx, (B, C, H, W), dtype=jnp.float32)
    # PyTorch Linear layout: (out_features, in_features).
    w1 = 0.1 * jax.random.normal(k1, (hidden, C), dtype=jnp.float32)
    w2 = 0.1 * jax.random.normal(k2, (C, hidden), dtype=jnp.float32)

    out = jax.block_until_ready(se_block(x, w1, w2))
    ref = se_block_ref(x, w1, w2)
    assert out.shape == (B, C, H, W)
    assert jnp.allclose(out, ref, atol=1e-5, rtol=1e-5), "fused path mismatch"

    # Also exercise the streaming fallback on a small, non-tile-aligned shape
    # (HW = 35 -> ragged last lane tile handled by in-kernel masking).
    B2, C2, H2, W2 = 2, 24, 5, 7
    hid2 = C2 // 4
    x2 = jax.random.normal(kx, (B2, C2, H2, W2), dtype=jnp.float32)
    w1b = 0.1 * jax.random.normal(k1, (hid2, C2), dtype=jnp.float32)
    w2b = 0.1 * jax.random.normal(k2, (C2, hid2), dtype=jnp.float32)
    out2 = jax.block_until_ready(se_block(x2, w1b, w2b, force_streaming=True))
    ref2 = se_block_ref(x2, w1b, w2b)
    assert jnp.allclose(out2, ref2, atol=1e-5, rtol=1e-5), "streaming path mismatch"

    print("KERNEL_OK")
</pallas_src>

<mosaic_0001>
module attributes {stable_mosaic.version = 11 : i64} {
  func.func @_se_fused_kernel(%arg0: i32, %arg1: memref<1x32x256xf32, #tpu.memory_space<vmem>>, %arg2: memref<2x32xf32, #tpu.memory_space<vmem>>, %arg3: memref<32x2xf32, #tpu.memory_space<vmem>>, %arg4: memref<1x32x256xf32, #tpu.memory_space<vmem>>) attributes {dimension_semantics = [#tpu.dimension_semantics<parallel>], iteration_bounds = array<i64: 2>, scalar_prefetch = 0 : i64, scratch_operands = 0 : i64, tpu.core_type = #tpu.core_type<tc>, window_params = [{transform_indices = @transform_0, window_bounds = array<i64: 1, 32, 256>}, {pipeline_mode = #tpu.pipeline_mode<synchronous>, transform_indices = @transform_1, window_bounds = array<i64: 2, 32>}, {pipeline_mode = #tpu.pipeline_mode<synchronous>, transform_indices = @transform_2, window_bounds = array<i64: 32, 2>}, {transform_indices = @transform_3, window_bounds = array<i64: 1, 32, 256>}]} {
    %c0 = arith.constant 0 : index
    %c0_0 = arith.constant 0 : index
    %c0_1 = arith.constant 0 : index
    %0 = vector.load %arg1[%c0, %c0_0, %c0_1] : memref<1x32x256xf32, #tpu.memory_space<vmem>>, vector<1x32x256xf32>
    %1 = vector.shape_cast %0 : vector<1x32x256xf32> to vector<32x256xf32>
    %cst = arith.constant dense<0.000000e+00> : vector<32xf32>
    %2 = vector.multi_reduction <add>, %1, %cst [1] : vector<32x256xf32> to vector<32xf32>
    %3 = vector.shape_cast %2 : vector<32xf32> to vector<32x1xf32>
    %cst_2 = arith.constant 3.906250e-03 : f32
    %4 = vector.broadcast %cst_2 : f32 to vector<32x1xf32>
    %5 = arith.mulf %3, %4 : vector<32x1xf32>
    %c0_3 = arith.constant 0 : index
    %c0_4 = arith.constant 0 : index
    %6 = vector.load %arg2[%c0_3, %c0_4] : memref<2x32xf32, #tpu.memory_space<vmem>>, vector<2x32xf32>
    %cst_5 = arith.constant dense<0.000000e+00> : vector<2x1xf32>
    %7 = tpu.matmul %6, %5, %cst_5 {dimension_numbers = #tpu.dot_dimension_numbers<[1], [0], [0], [1], [0, 0, 1, 1], [], []>} : vector<2x32xf32>, vector<32x1xf32>, vector<2x1xf32> -> vector<2x1xf32>
    %cst_6 = arith.constant 0.000000e+00 : f32
    %8 = vector.broadcast %cst_6 : f32 to vector<2x1xf32>
    %9 = arith.maximumf %7, %8 : vector<2x1xf32>
    %10 = math.absf %7 : vector<2x1xf32>
    %cst_7 = arith.constant 0.000000e+00 : f32
    %11 = vector.broadcast %cst_7 : f32 to vector<2x1xf32>
    %12 = arith.subf %11, %10 : vector<2x1xf32>
    %13 = math.exp %12 : vector<2x1xf32>
    %14 = math.log1p %13 : vector<2x1xf32>
    %15 = arith.addf %9, %14 : vector<2x1xf32>
    %16 = math.tanh %15 : vector<2x1xf32>
    %17 = arith.mulf %7, %16 : vector<2x1xf32>
    %c0_8 = arith.constant 0 : index
    %c0_9 = arith.constant 0 : index
    %18 = vector.load %arg3[%c0_8, %c0_9] : memref<32x2xf32, #tpu.memory_space<vmem>>, vector<32x2xf32>
    %cst_10 = arith.constant dense<0.000000e+00> : vector<32x1xf32>
    %19 = tpu.matmul %18, %17, %cst_10 {dimension_numbers = #tpu.dot_dimension_numbers<[1], [0], [0], [1], [0, 0, 1, 1], [], []>} : vector<32x2xf32>, vector<2x1xf32>, vector<32x1xf32> -> vector<32x1xf32>
    %20 = arith.negf %19 : vector<32x1xf32>
    %21 = math.exp %20 : vector<32x1xf32>
    %cst_11 = arith.constant 1.000000e+00 : f32
    %22 = vector.broadcast %cst_11 : f32 to vector<32x1xf32>
    %23 = arith.addf %22, %21 : vector<32x1xf32>
    %24 = arith.divf %22, %23 : vector<32x1xf32>
    %25 = vector.broadcast %24 : vector<32x1xf32> to vector<32x256xf32>
    %26 = arith.mulf %1, %25 : vector<32x256xf32>
    %c0_12 = arith.constant 0 : index
    %c0_13 = arith.constant 0 : index
    %c0_14 = arith.constant 0 : index
    %27 = vector.load %arg4[%c0_12, %c0_13, %c0_14] : memref<1x32x256xf32, #tpu.memory_space<vmem>>, vector<1x32x256xf32>
    %28 = vector.shape_cast %27 : vector<1x32x256xf32> to vector<32x256xf32>
    %29 = vector.shape_cast %26 : vector<32x256xf32> to vector<1x32x256xf32>
    tpu.vector_store %arg4[%c0_12, %c0_13, %c0_14], %29 {strides = array<i32>} : memref<1x32x256xf32, #tpu.memory_space<vmem>>, vector<1x32x256xf32>,
    return
  }
  func.func @transform_0(%arg0: i32) -> (i32, i32, i32) {
    %c0_i32 = arith.constant 0 : i32
    %c0_i32_0 = arith.constant 0 : i32
    %c0_i32_1 = arith.constant 0 : i32
    return %arg0, %c0_i32, %c0_i32_0 : i32, i32, i32
  }
  func.func @transform_1(%arg0: i32) -> (i32, i32) {
    %c0_i32 = arith.constant 0 : i32
    %c0_i32_0 = arith.constant 0 : i32
    %c0_i32_1 = arith.constant 0 : i32
    return %c0_i32, %c0_i32_0 : i32, i32
  }
  func.func @transform_2(%arg0: i32) -> (i32, i32) {
    %c0_i32 = arith.constant 0 : i32
    %c0_i32_0 = arith.constant 0 : i32
    %c0_i32_1 = arith.constant 0 : i32
    return %c0_i32, %c0_i32_0 : i32, i32
  }
  func.func @transform_3(%arg0: i32) -> (i32, i32, i32) {
    %c0_i32 = arith.constant 0 : i32
    %c0_i32_0 = arith.constant 0 : i32
    %c0_i32_1 = arith.constant 0 : i32
    return %arg0, %c0_i32, %c0_i32_0 : i32, i32, i32
  }
}

</mosaic_0001>

<bundles_post_ra>
// kernel: tpu_custom_call.1
= control target key start
LH: loop header
LB: loop body
LE: loop exit
PB: predicated region body
PF: predicated region fallthrough
CT: control target
= control target key end

     0   :  { %8 = vsyncpa [#allocation3], 0  ;;  %s1022_s0 = inlined_call_operand.hbm [shape: f32[2,32,256], index: 0, kind: input, shape index: {}]   ;;  %s1023_s1 = inlined_call_operand.vmem [shape: f32[2,32], index: 1, kind: input, shape index: {}]   ;;  %s1024_s2 = inlined_call_operand.vmem [shape: f32[32,2], index: 2, kind: input, shape index: {}]   ;;  %s1025_s3 = inlined_call_operand.hbm [shape: f32[2,32,256], index: 3, kind: output, shape index: {}]  }
   0x1   :  { %10 = vsyncpa [#allocation3 + $0x1], 0 }
   0x2   :  { %11 = vsyncpa [#allocation4], 0 }
   0x3   :  { %13 = vsyncpa [#allocation4 + $0x1], 0  ;;  %s813_s12 = smov 0   ;;  %s815_s13 = smov 0  }
   0x4   :  { %s817_s14 = smov 0   ;;  %s819_s15 = smov 0  }
   0x5 LB: > { %s834_s16 = sadd.s32 4294967295, %s782_s15   ;;  %s558_s17 = sadd.s32 4294967294, %s782_s15   ;;  %s782_s15 = sphi %s819_s15, %s1040_s15   ;;  %s778_s14 = sphi %s817_s14, %s1039_s14   ;;  %s774_s13 = sphi %s815_s13, %s1038_s13   ;;  %s770_s12 = sphi %s813_s12, %s1037_s12  }
   0x6   : > { %s838_s18 = sadd.s32 1, %s782_s15   ;;  %s26_s19 = sadd.s32 1, %s778_s14 }
   0x7   : > { %s23_s20 = ssub.s32 %s782_s15, %s838_s18  ;;  %p33_p0 = scmp.ne.s32.totalorder %s778_s14, %s774_s13 }
   0x8   : > { %p24_p1 = scmp.eq.s32.totalorder %s23_s20, 0  ;;  %p34_p2 = scmp.eq.s32.totalorder %s782_s15, 0 }
   0x9   : > { %p39_p3 = scmp.ne.s32.totalorder %s774_s13, %s770_s12  ;;  %p40_p4 = scmp.eq.s32.totalorder %s834_s16, 0 }
   0xa   : > { %s850_s21 = scalar_select %p24_p1, %s778_s14, %s26_s19  }
   0xb   : > { %p852_p5 = por %p34_p2, %p33_p0  ;;  %p856_p6 = por %p40_p4, %p39_p3 }
   0xc   : > { %p105_p7 = scmp.eq.s32.totalorder %s834_s16, 1  ;;  %p111_p8 = scmp.eq.s32.totalorder %s558_s17, 1 }
   0xd   : > { %s1029_s23 = scalar_select %p856_p6, 1, 0 }
   0xe   : > { %p625_p10 = scmp.lt.s32.totalorder %s782_s15, 2  ;;  %p863_p11 = por %p105_p7, %p33_p0 }
   0xf   : > { %p867_p12 = por %p111_p8, %p39_p3  ;;  %s137_s26 = sand.u32 1, %s778_s14  }
  0x10   : > { %s1030_s24 = scalar_select %p863_p11, 1, 0 }
  0x11   : > { %s1031_s25 = scalar_select %p867_p12, 1, 0 }
  0x12   : > { %s582_s27 = sshll.u32 %s782_s15, 10  ;;  %s561_s28 = sshll.u32 %s137_s26, 6 }
  0x13   : > { %s876_s4 = scalar_lea.hbm %s1022_s0, %s582_s27  ;;  %s141_s5 = scalar_lea.vmem [#allocation2], %s561_s28 }
  0x14   : > { %s148_s6 = sshll.u32 %s141_s5, 4  ;;  %p880_p13 = pnand %p625_p10, %p852_p5  ;;  %s884_s6 = int_to_ptr.vmem [resolvable:$true] %s148_s6 }
  0x15   : > { %s886_s8 = scalar_lea.sflag [#allocation3], %s137_s26  ;;  %s690_s9 = scalar_lea.hbm %s876_s4, 1024 }
  0x16   : > { %p691_p0 = scmp.ne.s32.totalorder %s876_s4, %s690_s9  ;;  %p692_p1 = pneg %p880_p13 }
  0x17   : > { %s695_s17 = scalar_lea.hbm %s1022_s0, 2048  ;;  %p696_p4 = scmp.lt.s32.totalorder %s876_s4, %s1022_s0 }
  0x18   : > { %p693_p2 = pnand %p692_p1, %p691_p0  ;;  %p697_p5 = scmp.lt.s32.totalorder %s695_s17, %s690_s9 }
  0x1a   : > { %p694_p3 = pneg %p693_p2  ;;  %p698_p7 = por %p697_p5, %p696_p4 }
  0x1c   : > { %p699_p8 = pnand %p698_p7, %p694_p3 }
  0x1e   : > { %702 = shalt.err (!%p699_p8)
}
  0x1f   : > { %s703_s22 = scalar_lea.vmem %s884_s6, 1024  ;;  %s784_s26 = smov [#allocation2]  }
  0x20   : > { %p704_p10 = scmp.ne.s32.totalorder %s884_s6, %s703_s22  ;;  %s708_s27 = sshll.u32 %s784_s26, 4  ;;  %s709_s27 = int_to_ptr.vmem [resolvable:$false] %s708_s27 }
  0x21   : > { %s710_s28 = scalar_lea.vmem %s709_s27, 2048  ;;  %p711_p2 = scmp.lt.s32.totalorder %s884_s6, %s709_s27 }
  0x22   : > { %p706_p9 = pnand %p704_p10, %p692_p1  ;;  %p712_p12 = scmp.lt.s32.totalorder %s710_s28, %s703_s22 }
  0x24   : > { %p707_p0 = pneg %p706_p9  ;;  %p713_p11 = por %p712_p12, %p711_p2 }
  0x26   : > { %p714_p6 = pnand %p713_p11, %p707_p0 }
  0x28   : > { %717 = shalt.err (!%p714_p6)
}
  0x29   : > { %s785_s29 = smov 256   ;;  %s786_s30 = smov 16  }
  0x2a   : > { %620 = dma.hbm_to_vmem [thread:$0]  (!%p880_p13), %s876_s4, 1024, %s884_s6, %s886_s8, %s785_s29, %s785_s29, %s786_s30  }
  0x2b   : > { %p564_p9 = scmp.ge.s32.totalorder %s782_s15, 1  ;;  %p156_p1 = scmp.lt.s32.totalorder %s782_s15, 3 }
  0x2d   : > { %p157_p3 = pnand %p564_p9, %p156_p1 }
  0x2e   : > { %s910_s5 = sand.u32 (!%p157_p3), 1, %s774_s13   ;;  %p1033_p6 = scmp.ne.s32.totalorder (!%p157_p3), %s1029_s23, 0 }
  0x2f   : > { %160 = sbr.rel (%p157_p3) target bundleno = 832 (0x340), region = 32  ;;  %s565_s9 = sshll.u32 (!%p157_p3), %s910_s5, 6 }
  0x30   : > { %s163_s10 = scalar_lea.sflag (!%p157_p3), [#allocation3], %s910_s5  ;;  %s166_s11 = scalar_lea.vmem (!%p157_p3), [#allocation2], %s565_s9 }
  0x34   : > { %761 = dma.done.wait (%p1033_p6), %s163_s10, 1024  }
  0x35   : > { %763 = vsyncadd (%p1033_p6), %s163_s10, 4294966272  ;;  %v920_v0 = vld [vmem:[%s166_s11 + $0x30] sm:$0xff]  ;;  %v922_v1 = vld [vmem:[%s166_s11 + $0x38] sm:$0xff]  ;;  %v787_v12 = vmov 0.0   ;;  %vm788_vm0 = vmmov 0   ;;  %vm214_vm1 = vcmask 261120  }
  0x36   : > { %v924_v2 = vld [vmem:[%s166_s11 + $0x20] sm:$0xff]  ;;  %v206_v3 = vadd.f32 %v922_v1, %v920_v0  ;;  %v928_v4 = vld [vmem:[%s166_s11 + $0x28] sm:$0xff]  ;;  %v930_v5 = vld [vmem:[%s166_s11 + $0x10] sm:$0xff]  ;;  %594 = vmatprep.subr.mxu0 %v787_v12  ;;  %602 = vmatprep.mubr.msk.f32.mxu0 %vm788_vm0, %v787_v12  ;;  %vm309_vm2 = vcmask 15360   ;;  %vm322_vm4 = vcmask 1041408   ;;  %v789_v44 = vmov 0  }
  0x37   : > { %v932_v6 = vld [vmem:[%s166_s11 + $0x18] sm:$0xff]  ;;  %v936_v8 = vld [vmem:[%s166_s11] sm:$0xff]  ;;  %v938_v9 = vld [vmem:[%s166_s11 + $0x8] sm:$0xff]  ;;  %v203_v10 = vadd.f32 %v928_v4, %v924_v2  ;;  %667 = vset.pattern.permute.xlu1 %v789_v44  ;;  %666 = vset.pattern.permute.xlu0 %v789_v44  ;;  %s188_s27 = scalar_lea.vmem [#allocation5], %s565_s9  ;;  %s583_s29 = sshll.u32 %s834_s16, 10 }
  0x38   : > { %v200_v7 = vadd.f32 %v932_v6, %v930_v5  ;;  %207 = vadd.xlane.f32.xlu0 %v206_v3  ;;  %v197_v11 = vadd.f32 %v938_v9, %v936_v8  ;;  %v213_v21 = vld [vmem:[%s1023_s1] sm:$0x3]  ;;  %v306_v41 = vld [vmem:[%s1024_s2 + $0x8] sm:$0xff]  ;;  %v307_v42 = vld [vmem:[%s1024_s2 + $0x10] sm:$0xff]  ;;  %s485_s28 = sshll.u32 %s188_s27, 4  ;;  %s977_s10 = scalar_lea.hbm %s1025_s3, %s583_s29  ;;  %s972_s28 = int_to_ptr.vmem [resolvable:$true] %s485_s28 }
  0x39   : > { %v305_v22 = vld [vmem:[%s1024_s2] sm:$0xff]  ;;  %v308_v43 = vld [vmem:[%s1024_s2 + $0x18] sm:$0xff]  ;;  %s472_s16 = scalar_lea.sflag [#allocation4], %s910_s5  ;;  %s718_s11 = scalar_lea.vmem %s972_s28, 1024 }
  0x3a   : > { %201 = vadd.xlane.f32.xlu1 %v200_v7  ;;  %607 = vmatprep.mubr.msk.f32.mxu1 %vm309_vm2, %v305_v22  ;;  %p719_p11 = scmp.ne.s32.totalorder %s972_s28, %s718_s11  ;;  %p1034_p12 = scmp.ne.s32.totalorder %s1030_s24, 0 }
  0x3b   : > { %s790_s23 = smov [#allocation5]  }
  0x3c   : > { %204 = vadd.xlane.f32.xlu0 %v203_v10  ;;  %p720_p13 = pnand %p719_p11, %p1034_p12  ;;  %s722_s4 = sshll.u32 %s790_s23, 4  ;;  %s723_s4 = int_to_ptr.vmem [resolvable:$false] %s722_s4 }
  0x3d   : > { %s724_s6 = scalar_lea.vmem %s723_s4, 2048  ;;  %p725_p5 = scmp.lt.s32.totalorder %s972_s28, %s723_s4 }
  0x3e   : > { %198 = vadd.xlane.f32.xlu1 %v197_v11  ;;  %p721_p4 = pneg %p720_p13  ;;  %p726_p7 = scmp.lt.s32.totalorder %s724_s6, %s718_s11 }
  0x40   : > { %p727_p8 = por %p726_p7, %p725_p5 }
  0x42   : > { %p728_p10 = pnand %p727_p8, %p721_p4 }
  0xc1   : > { %v208_v13 = vpop.xlane.xlu0 %207 }
  0xc2   : > { %v212_v14 = vmul.f32 0.00390625, %v208_v13 }
  0xc3   : > { %v202_v15 = vpop.xlane.xlu1 %201 }
  0xc4   : > { %595 = vmatpush3.msra.mxu0 %v212_v14  ;;  %v210_v19 = vmul.f32 0.00390625, %v202_v15 }
  0xc5   : > { %v205_v16 = vpop.xlane.xlu0 %204  ;;  %596 = vmatprep.subr.mxu0 %v787_v12 }
  0xc6   : > { %v211_v17 = vmul.f32 0.00390625, %v205_v16 }
  0xc7   : > { %v199_v18 = vpop.xlane.xlu1 %198 }
  0xc8   : > { %597 = vmatpush3.msra.mxu0 %v211_v17  ;;  %v209_v20 = vmul.f32 0.00390625, %v199_v18 }
  0xc9   : > { %598 = vmatprep.subr.mxu0 %v787_v12 }
  0xca   : > { %599 = vmatpush3.msra.mxu0 %v210_v19 }
  0xcb   : > { %600 = vmatprep.subr.mxu0 %v787_v12 }
  0xcc   : > { %601 = vmatpush3.msra.mxu0 %v209_v20 }
  0xcd   : > { %603 = vmatmul.mubr.msk.f32.vlgmr.msra.gmra.mxu0 %vm214_vm1, %v213_v21 }
 0x18d   : > { %v284_v23 = vpop.f32.mrf.mxu0 }
 0x18e   : > { %v289_v24 = vand.u32 2147483647, %v284_v23  ;;  %v288_v36 = vmax.f32 %v284_v23, 0.0 }
 0x18f   : > { %v604_v25 = vpop.f32.mrf.mxu0 }
 0x190   : > { %v290_v26 = vsub.f32 0.0, %v289_v24 }
 0x192   : > { %v291_v27 = vmul.f32 1.442695, %v290_v26 }
 0x194   : > { %668 = vpow2.f32 %v291_v27 }
 0x1a1   : > { %v669_v28 = vpop.eup %668 }
 0x1a2   : > { %v293_v29 = vadd.f32 1.0, %v669_v28  ;;  %v296_v30 = vmul.f32 -0.5, %v669_v28  ;;  %v299_v32 = vand.u32 2147483647, %v669_v28 }
 0x1a4   : > { %670 = vlog2.f32 %v293_v29  ;;  %v297_v31 = vadd.f32 1.0, %v296_v30  ;;  %vm300_vm3 = vcmp.lt.f32.partialorder %v299_v32, 0.0004427343 }
 0x1a6   : > { %v298_v35 = vmul.f32 %v669_v28, %v297_v31 }
 0x1b1   : > { %v671_v33 = vpop.eup %670 }
 0x1b2   : > { %v295_v34 = vmul.f32 0.6931472, %v671_v33 }
 0x1b4   : > { %v301_v37 = vsel %vm300_vm3, %v298_v35, %v295_v34 }
 0x1b5   : > { %v302_v38 = vadd.f32 %v301_v37, %v288_v36 }
 0x1b7   : > { %672 = vtanh.f32 %v302_v38 }
 0x1c4   : > { %v673_v39 = vpop.eup %672 }
 0x1c5   : > { %v304_v40 = vmul.f32 %v673_v39, %v284_v23 }
 0x1c7   : > { %605 = vmatprep.subr.msk.mxu1 %vm322_vm4, %v304_v40 }
 0x1c8   : > { %606 = vmatpush3.msk.msra.mxu1 %vm322_vm4, %v304_v40 }
 0x1c9   : > { %608 = vmatmul.mubr.msk.f32.vlgmr.msra.gmra.mxu1 %vm309_vm2, %v306_v41 }
 0x1ca   : > { %610 = vmatprep.mubr.msk.f32.mxu1 %vm309_vm2, %v307_v42 }
 0x1cd   : > { %611 = vmatmul.mubr.msk.f32.gmra.mxu1 %vm309_vm2, %v308_v43 }
 0x289   : > { %v609_v45 = vpop.f32.mrf.mxu1 }
 0x28a   : > { %v574_v46 = vmul.f32 -1.442695, %v609_v45 }
 0x28b   : > { %v392_v47 = vpop.f32.mrf.mxu1 }
 0x28c   : > { %674 = vpow2.f32 %v574_v46  ;;  %v573_v48 = vmul.f32 -1.442695, %v392_v47 }
 0x28d   : > { %v612_v49 = vpop.f32.mrf.mxu1 }
 0x28e   : > { %676 = vpow2.f32 %v573_v48  ;;  %v576_v50 = vmul.f32 -1.442695, %v612_v49 }
 0x28f   : > { %v402_v51 = vpop.f32.mrf.mxu1 }
 0x290   : > { %v575_v52 = vmul.f32 -1.442695, %v402_v51  ;;  %678 = vpow2.f32 %v576_v50 }
 0x292   : > { %680 = vpow2.f32 %v575_v52 }
 0x299   : > { %v675_v53 = vpop.eup %674 }
 0x29a   : > { %v424_v54 = vadd.f32 1.0, %v675_v53 }
 0x29b   : > { %v677_v55 = vpop.eup %676 }
 0x29c   : > { %682 = vrcp.f32 %v424_v54  ;;  %v423_v56 = vadd.f32 1.0, %v677_v55 }
 0x29d   : > { %v679_v57 = vpop.eup %678 }
 0x29e   : > { %684 = vrcp.f32 %v423_v56  ;;  %v426_v60 = vadd.f32 1.0, %v679_v57 }
 0x29f   : > { %v681_v58 = vpop.eup %680 }
 0x2a0   : > { %v425_v59 = vadd.f32 1.0, %v681_v58 }
 0x2a2   : > { %686 = vrcp.f32 %v425_v59 }
 0x2a3   : > { %688 = vrcp.f32 %v426_v60 }
 0x2a9   : > { %v683_v61 = vpop.eup %682 }
 0x2aa   : > { %442 = vperm.xlu1 %667, %v683_v61  }
 0x2ab   : > { %v685_v62 = vpop.eup %684 }
 0x2ac   : > { %437 = vperm.xlu0 %666, %v685_v62  }
 0x2af   : > { %v687_v63 = vpop.eup %686 }
 0x2b0   : > { %447 = vperm.xlu1 %667, %v687_v63   ;;  %v689_v3 = vpop.eup %688 }
 0x2b4   : > { %452 = vperm.xlu1 %667, %v689_v3  }
 0x325   : > { %v443_v7 = vpop.permute.xlu1 %442 }
 0x326   : > { %v457_v10 = vmul.f32 %v443_v7, %v930_v5  ;;  %v458_v11 = vmul.f32 %v443_v7, %v932_v6 }
 0x327   : > { %v438_v12 = vpop.permute.xlu0 %437 }
 0x328   : > { %465 = vst [vmem:[%s188_s27 + $0x10] sm:$0xff] %v457_v10  ;;  %466 = vst [vmem:[%s188_s27 + $0x18] sm:$0xff] %v458_v11  ;;  %v455_v13 = vmul.f32 %v438_v12, %v936_v8  ;;  %v456_v14 = vmul.f32 %v438_v12, %v938_v9 }
 0x32a   : > { %463 = vst [vmem:[%s188_s27] sm:$0xff] %v455_v13  ;;  %464 = vst [vmem:[%s188_s27 + $0x8] sm:$0xff] %v456_v14 }
 0x32b   : > { %v448_v15 = vpop.permute.xlu1 %447 }
 0x32c   : > { %v459_v16 = vmul.f32 %v448_v15, %v924_v2  ;;  %v460_v5 = vmul.f32 %v448_v15, %v928_v4 }
 0x32e   : > { %467 = vst [vmem:[%s188_s27 + $0x20] sm:$0xff] %v459_v16  ;;  %468 = vst [vmem:[%s188_s27 + $0x28] sm:$0xff] %v460_v5 }
 0x32f   : > { %v453_v6 = vpop.permute.xlu1 %452 }
 0x330   : > { %v461_v8 = vmul.f32 %v453_v6, %v920_v0  ;;  %v462_v2 = vmul.f32 %v453_v6, %v922_v1 }
 0x332   : > { %469 = vst [vmem:[%s188_s27 + $0x30] sm:$0xff] %v461_v8  ;;  %470 = vst [vmem:[%s188_s27 + $0x38] sm:$0xff] %v462_v2 }
 0x333   : > { %731 = shalt.err (!%p728_p10)
}
 0x334   : > { %s732_s7 = scalar_lea.hbm %s977_s10, 1024  ;;  %s736_s19 = scalar_lea.hbm %s1025_s3, 2048 }
 0x335   : > { %p733_p0 = scmp.ne.s32.totalorder %s977_s10, %s732_s7  ;;  %p737_p1 = scmp.lt.s32.totalorder %s977_s10, %s1025_s3 }
 0x336   : > { %p738_p3 = scmp.lt.s32.totalorder %s736_s19, %s732_s7 }
 0x337   : > { %p734_p2 = pnand %p733_p0, %p1034_p12 }
 0x338   : > { %p739_p6 = por %p738_p3, %p737_p1 }
 0x339   : > { %p735_p9 = pneg %p734_p2 }
 0x33b   : > { %p740_p11 = pnand %p739_p6, %p735_p9 }
 0x33d   : > { %743 = shalt.err (!%p740_p11)
}
 0x33e   : > { %s791_s26 = smov 256   ;;  %s792_s27 = smov 16  }
 0x33f   : > { %615 = dma.vmem_to_hbm [thread:$0]  (%p1034_p12), %s972_s28, 1024, %s977_s10, %s472_s16, %s791_s26, %s791_s26, %s792_s27  }
 0x340 PF: > { %s500_s29 = sand.u32 1, %s770_s12   ;;  %p1035_p13 = scmp.ne.s32.totalorder %s1031_s25, 0 }
 0x341   : > { %p1036_p4 = scmp.ge.s32.totalorder %s782_s15, 2  ;;  %s501_s30 = scalar_lea.sflag [#allocation4], %s500_s29 }
 0x343   : > { %p622_p5 = pnand %p1036_p4, %p1035_p13 }
 0x345   : > { %p623_p7 = pneg %p622_p5 }
 0x347   : > { %765 = dma.done.wait (%p623_p7), %s501_s30, 1024  }
 0x348   : > { %767 = vsyncadd (%p623_p7), %s501_s30, 4294966272  ;;  %p16_p8 = scmp.ge.s32.totalorder %s838_s18, 4   ;;  %s1037_s12 = smov %s774_s13 }
 0x349   : > { %s1038_s13 = smov %s778_s14  ;;  %s1039_s14 = smov %s850_s21 }
 0x34a   : > { %s1040_s15 = smov %s838_s18  ;;  %18 = sbr.rel (!%p16_p8) target bundleno = 5 (0x5), region = 77 }
 0x34f   :  { %506 = vsyncpa [#allocation3], 1 }
 0x350   :  { %508 = vsyncpa [#allocation3 + $0x1], 1 }
 0x351   :  { %509 = vsyncpa [#allocation4], 1 }
 0x352   :  { %511 = vsyncpa [#allocation4 + $0x1], 1 }

</bundles_post_ra>
